<compile_context>
chip_gen: v7x
topology: tpu7x:2x2x1
jax: 0.10.0
libtpu: 0.0.40
codegen_flags: <defaults>
</compile_context>

<pallas_src>
import functools

import jax
import jax.numpy as jnp
from jax import lax
from jax.experimental import pallas as pl
from jax.experimental.pallas import tpu as pltpu


def _ce_ls_kernel(x_ref, t_ref, o_ref, m_sc, l_sc, sx_sc, xl_sc, *,
                  epsilon, num_classes, n_rows, block_n, block_c):
    ni = pl.program_id(0)
    ci = pl.program_id(1)
    last_c = pl.num_programs(1) - 1

    @pl.when(ci == 0)
    def _init():
        m_sc[...] = jnp.full_like(m_sc, -jnp.inf)
        l_sc[...] = jnp.zeros_like(l_sc)
        sx_sc[...] = jnp.zeros_like(sx_sc)
        xl_sc[...] = jnp.zeros_like(xl_sc)

    x = x_ref[...].astype(jnp.float32)              # (block_n, block_c)
    labels = t_ref[...]                             # (block_n, 1) int32

    col_ids = ci * block_c + lax.broadcasted_iota(jnp.int32, x.shape, 1)
    if num_classes % block_c != 0:                  # ragged class tail: mask
        valid_c = col_ids < num_classes
        x_max_src = jnp.where(valid_c, x, -jnp.inf)
        x_sum_src = jnp.where(valid_c, x, 0.0)
    else:
        x_max_src = x
        x_sum_src = x

    # Online log-sum-exp update across class tiles.
    tile_max = jnp.max(x_max_src, axis=1, keepdims=True)
    m_new = jnp.maximum(m_sc[...], tile_max)
    alpha = jnp.exp(m_sc[...] - m_new)
    l_sc[...] = alpha * l_sc[...] + jnp.sum(
        jnp.exp(x_max_src - m_new), axis=1, keepdims=True)
    # Running sum of logits and gathered logit at the target label.
    sx_sc[...] += jnp.sum(x_sum_src, axis=1, keepdims=True)
    xl_sc[...] += jnp.sum(jnp.where(col_ids == labels, x, 0.0),
                          axis=1, keepdims=True)
    m_sc[...] = m_new

    @pl.when(ci == last_c)
    def _finalize():
        lse = m_sc[...] + jnp.log(l_sc[...])
        loss_rows = (lse
                     - (1.0 - epsilon) * xl_sc[...]
                     - (epsilon / num_classes) * sx_sc[...])
        if n_rows % block_n != 0:                   # ragged batch tail: mask
            row_ids = ni * block_n + lax.broadcasted_iota(
                jnp.int32, loss_rows.shape, 0)
            loss_rows = jnp.where(row_ids < n_rows, loss_rows, 0.0)
        o_ref[...] = loss_rows


def _choose_tiles(n, c, itemsize):
    # Class tile: whole class dim if small (a block equal to the full dim is
    # always legal); else 2048 columns (multiple of 128), ragged tail masked.
    block_c = c if c <= 2048 else 2048
    # Batch tile: largest multiple of 8 keeping the logits tile ~2 MiB
    # (double-buffered -> ~4 MiB), capped at 512 rows.
    rows_budget = max(8, (2 * 1024 * 1024) // max(1, block_c * itemsize))
    block_n = min(512, rows_budget)
    block_n = max(8, (block_n // 8) * 8)
    if n <= block_n:
        block_n = n
    return block_n, block_c


def cross_entropy_label_smooth(inputs, targets, *, num_classes, epsilon,
                               block_n=None, block_c=None):
    """JAX/Pallas equivalent of CrossEntropyLabelSmooth.forward.

    Args:
      inputs:  (N, C) float logits (f32 or bf16 — streamed at HBM dtype).
      targets: (N,) integer class labels.
    Returns:
      scalar float32 loss = (-smoothed_onehot * log_softmax(inputs)).mean(0).sum()
    """
    n, c = inputs.shape
    assert c == num_classes
    itemsize = jnp.dtype(inputs.dtype).itemsize
    auto_n, auto_c = _choose_tiles(n, c, itemsize)
    block_n = auto_n if block_n is None else int(block_n)
    block_c = auto_c if block_c is None else int(block_c)

    t2d = targets.astype(jnp.int32).reshape(n, 1)
    grid = (pl.cdiv(n, block_n), pl.cdiv(c, block_c))

    kernel = functools.partial(
        _ce_ls_kernel, epsilon=float(epsilon), num_classes=int(num_classes),
        n_rows=int(n), block_n=int(block_n), block_c=int(block_c))

    tile_bytes = block_n * block_c * itemsize
    vmem_limit = int(min(max(4 * tile_bytes + (1 << 20), 16 * 1024 * 1024),
                         32 * 1024 * 1024))

    cost = pl.CostEstimate(
        flops=int(6 * n * c),
        transcendentals=int(n * c),
        bytes_accessed=int(n * c * itemsize + 2 * n * 4),
    )

    per_row = pl.pallas_call(
        kernel,
        out_shape=jax.ShapeDtypeStruct((n, 1), jnp.float32),
        grid_spec=pltpu.PrefetchScalarGridSpec(
            num_scalar_prefetch=0,
            grid=grid,
            in_specs=[
                pl.BlockSpec((block_n, block_c), lambda i, j: (i, j)),
                pl.BlockSpec((block_n, 1), lambda i, j: (i, 0)),
            ],
            out_specs=pl.BlockSpec((block_n, 1), lambda i, j: (i, 0)),
            scratch_shapes=[pltpu.VMEM((block_n, 1), jnp.float32)] * 4,
        ),
        compiler_params=pltpu.CompilerParams(
            dimension_semantics=("parallel", "arbitrary"),
            vmem_limit_bytes=vmem_limit,
        ),
        cost_estimate=cost,
    )(inputs, t2d)

    # Tiny final reduction (N adds) + 1/N scale in plain XLA.
    return jnp.sum(per_row) / n


def _reference(inputs, targets, num_classes, epsilon):
    # Pure-JAX reference mirroring the PyTorch module.
    log_probs = jax.nn.log_softmax(inputs.astype(jnp.float32), axis=1)
    one_hot = jax.nn.one_hot(targets, num_classes, dtype=jnp.float32)
    smoothed = (1 - epsilon) * one_hot + epsilon / num_classes
    return jnp.sum(jnp.mean(-smoothed * log_probs, axis=0))


if __name__ == "__main__":
    key = jax.random.PRNGKey(0)
    k1, k2, k3, k4 = jax.random.split(key, 4)
    epsilon = 0.1

    # Test 1: small single-tile case (grid = (1, 1)).
    batch, num_classes = 8, 16
    x1 = jax.random.normal(k1, (batch, num_classes), dtype=jnp.float32)
    t1 = jax.random.randint(k2, (batch,), 0, num_classes, dtype=jnp.int32)
    loss1 = jax.block_until_ready(
        cross_entropy_label_smooth(x1, t1, num_classes=num_classes,
                                   epsilon=epsilon))
    ref1 = _reference(x1, t1, num_classes, epsilon)
    assert jnp.allclose(loss1, ref1, rtol=1e-5, atol=1e-4), (loss1, ref1)

    # Test 2: ragged multi-tile grid (3 batch tiles x 3 class tiles) to
    # exercise the online-softmax accumulation and row/column masking.
    n2, c2 = 20, 300
    x2 = jax.random.normal(k3, (n2, c2), dtype=jnp.float32)
    t2 = jax.random.randint(k4, (n2,), 0, c2, dtype=jnp.int32)
    loss2 = jax.block_until_ready(
        cross_entropy_label_smooth(x2, t2, num_classes=c2, epsilon=epsilon,
                                   block_n=8, block_c=128))
    ref2 = _reference(x2, t2, c2, epsilon)
    assert jnp.allclose(loss2, ref2, rtol=1e-5, atol=1e-4), (loss2, ref2)

    print("KERNEL_OK")
</pallas_src>

<mosaic_0001>
module attributes {stable_mosaic.version = 11 : i64} {
  func.func @_ce_ls_kernel(%arg0: i32, %arg1: i32, %arg2: memref<8x16xf32, #tpu.memory_space<vmem>>, %arg3: memref<8x1xi32, #tpu.memory_space<vmem>>, %arg4: memref<8x1xf32, #tpu.memory_space<vmem>>, %arg5: memref<8x1xf32, #tpu.memory_space<vmem>>, %arg6: memref<8x1xf32, #tpu.memory_space<vmem>>, %arg7: memref<8x1xf32, #tpu.memory_space<vmem>>, %arg8: memref<8x1xf32, #tpu.memory_space<vmem>>) attributes {dimension_semantics = [#tpu.dimension_semantics<parallel>, #tpu.dimension_semantics<arbitrary>], iteration_bounds = array<i64: 1, 1>, scalar_prefetch = 0 : i64, scratch_operands = 4 : i64, tpu.core_type = #tpu.core_type<tc>, window_params = [{transform_indices = @transform_0, window_bounds = array<i64: 8, 16>}, {transform_indices = @transform_1, window_bounds = array<i64: 8, 1>}, {transform_indices = @transform_2, window_bounds = array<i64: 8, 1>}]} {
    %c0_i32 = arith.constant 0 : i32
    %0 = arith.cmpi eq, %arg1, %c0_i32 : i32
    %1 = arith.extui %0 : i1 to i32
    %c0_i32_0 = arith.constant 0 : i32
    %2 = arith.cmpi ne, %1, %c0_i32_0 : i32
    scf.if %2 {
      %cst_28 = arith.constant 0xFF800000 : f32
      %43 = vector.broadcast %cst_28 : f32 to vector<8x1xf32>
      %c0_29 = arith.constant 0 : index
      %c0_30 = arith.constant 0 : index
      %44 = vector.load %arg5[%c0_29, %c0_30] : memref<8x1xf32, #tpu.memory_space<vmem>>, vector<8x1xf32>
      tpu.vector_store %arg5[%c0_29, %c0_30], %43 {strides = array<i32>} : memref<8x1xf32, #tpu.memory_space<vmem>>, vector<8x1xf32>,
      %cst_31 = arith.constant 0.000000e+00 : f32
      %45 = vector.broadcast %cst_31 : f32 to vector<8x1xf32>
      %c0_32 = arith.constant 0 : index
      %c0_33 = arith.constant 0 : index
      %46 = vector.load %arg6[%c0_32, %c0_33] : memref<8x1xf32, #tpu.memory_space<vmem>>, vector<8x1xf32>
      tpu.vector_store %arg6[%c0_32, %c0_33], %45 {strides = array<i32>} : memref<8x1xf32, #tpu.memory_space<vmem>>, vector<8x1xf32>,
      %cst_34 = arith.constant 0.000000e+00 : f32
      %47 = vector.broadcast %cst_34 : f32 to vector<8x1xf32>
      %c0_35 = arith.constant 0 : index
      %c0_36 = arith.constant 0 : index
      %48 = vector.load %arg7[%c0_35, %c0_36] : memref<8x1xf32, #tpu.memory_space<vmem>>, vector<8x1xf32>
      tpu.vector_store %arg7[%c0_35, %c0_36], %47 {strides = array<i32>} : memref<8x1xf32, #tpu.memory_space<vmem>>, vector<8x1xf32>,
      %cst_37 = arith.constant 0.000000e+00 : f32
      %49 = vector.broadcast %cst_37 : f32 to vector<8x1xf32>
      %c0_38 = arith.constant 0 : index
      %c0_39 = arith.constant 0 : index
      %50 = vector.load %arg8[%c0_38, %c0_39] : memref<8x1xf32, #tpu.memory_space<vmem>>, vector<8x1xf32>
      tpu.vector_store %arg8[%c0_38, %c0_39], %49 {strides = array<i32>} : memref<8x1xf32, #tpu.memory_space<vmem>>, vector<8x1xf32>,
    } else {
    }
    %c0 = arith.constant 0 : index
    %c0_1 = arith.constant 0 : index
    %3 = vector.load %arg2[%c0, %c0_1] : memref<8x16xf32, #tpu.memory_space<vmem>>, vector<8x16xf32>
    %c0_2 = arith.constant 0 : index
    %c0_3 = arith.constant 0 : index
    %4 = vector.load %arg3[%c0_2, %c0_3] : memref<8x1xi32, #tpu.memory_space<vmem>>, vector<8x1xi32>
    %c16_i32 = arith.constant 16 : i32
    %5 = arith.muli %arg1, %c16_i32 : i32
    %6 = tpu.iota {dimensions = array<i32: 1>} : vector<8x16xi32>
    %7 = vector.broadcast %5 : i32 to vector<8x16xi32>
    %8 = arith.addi %7, %6 : vector<8x16xi32>
    %cst = arith.constant dense<0xFF800000> : vector<8xf32>
    %9 = vector.multi_reduction <maximumf>, %3, %cst [1] : vector<8x16xf32> to vector<8xf32>
    %10 = vector.shape_cast %9 : vector<8xf32> to vector<8x1xf32>
    %c0_4 = arith.constant 0 : index
    %c0_5 = arith.constant 0 : index
    %11 = vector.load %arg5[%c0_4, %c0_5] : memref<8x1xf32, #tpu.memory_space<vmem>>, vector<8x1xf32>
    %12 = arith.maximumf %11, %10 : vector<8x1xf32>
    %c0_6 = arith.constant 0 : index
    %c0_7 = arith.constant 0 : index
    %13 = vector.load %arg5[%c0_6, %c0_7] : memref<8x1xf32, #tpu.memory_space<vmem>>, vector<8x1xf32>
    %14 = arith.subf %13, %12 : vector<8x1xf32>
    %15 = math.exp %14 : vector<8x1xf32>
    %c0_8 = arith.constant 0 : index
    %c0_9 = arith.constant 0 : index
    %16 = vector.load %arg6[%c0_8, %c0_9] : memref<8x1xf32, #tpu.memory_space<vmem>>, vector<8x1xf32>
    %17 = arith.mulf %15, %16 : vector<8x1xf32>
    %18 = vector.broadcast %12 : vector<8x1xf32> to vector<8x16xf32>
    %19 = arith.subf %3, %18 : vector<8x16xf32>
    %20 = math.exp %19 : vector<8x16xf32>
    %cst_10 = arith.constant dense<0.000000e+00> : vector<8xf32>
    %21 = vector.multi_reduction <add>, %20, %cst_10 [1] : vector<8x16xf32> to vector<8xf32>
    %22 = vector.shape_cast %21 : vector<8xf32> to vector<8x1xf32>
    %23 = arith.addf %17, %22 : vector<8x1xf32>
    %c0_11 = arith.constant 0 : index
    %c0_12 = arith.constant 0 : index
    %24 = vector.load %arg6[%c0_11, %c0_12] : memref<8x1xf32, #tpu.memory_space<vmem>>, vector<8x1xf32>
    tpu.vector_store %arg6[%c0_11, %c0_12], %23 {strides = array<i32>} : memref<8x1xf32, #tpu.memory_space<vmem>>, vector<8x1xf32>,
    %c0_13 = arith.constant 0 : index
    %c0_14 = arith.constant 0 : index
    %25 = vector.load %arg7[%c0_13, %c0_14] : memref<8x1xf32, #tpu.memory_space<vmem>>, vector<8x1xf32>
    %cst_15 = arith.constant dense<0.000000e+00> : vector<8xf32>
    %26 = vector.multi_reduction <add>, %3, %cst_15 [1] : vector<8x16xf32> to vector<8xf32>
    %27 = vector.shape_cast %26 : vector<8xf32> to vector<8x1xf32>
    %28 = arith.addf %25, %27 : vector<8x1xf32>
    %c0_16 = arith.constant 0 : index
    %c0_17 = arith.constant 0 : index
    %29 = vector.load %arg7[%c0_16, %c0_17] : memref<8x1xf32, #tpu.memory_space<vmem>>, vector<8x1xf32>
    tpu.vector_store %arg7[%c0_16, %c0_17], %28 {strides = array<i32>} : memref<8x1xf32, #tpu.memory_space<vmem>>, vector<8x1xf32>,
    %c0_18 = arith.constant 0 : index
    %c0_19 = arith.constant 0 : index
    %30 = vector.load %arg8[%c0_18, %c0_19] : memref<8x1xf32, #tpu.memory_space<vmem>>, vector<8x1xf32>
    %31 = vector.broadcast %4 : vector<8x1xi32> to vector<8x16xi32>
    %32 = arith.cmpi eq, %8, %31 : vector<8x16xi32>
    %cst_20 = arith.constant 0.000000e+00 : f32
    %33 = vector.broadcast %cst_20 : f32 to vector<8x16xf32>
    %34 = arith.select %32, %3, %33 : vector<8x16xi1>, vector<8x16xf32>
    %cst_21 = arith.constant dense<0.000000e+00> : vector<8xf32>
    %35 = vector.multi_reduction <add>, %34, %cst_21 [1] : vector<8x16xf32> to vector<8xf32>
    %36 = vector.shape_cast %35 : vector<8xf32> to vector<8x1xf32>
    %37 = arith.addf %30, %36 : vector<8x1xf32>
    %c0_22 = arith.constant 0 : index
    %c0_23 = arith.constant 0 : index
    %38 = vector.load %arg8[%c0_22, %c0_23] : memref<8x1xf32, #tpu.memory_space<vmem>>, vector<8x1xf32>
    tpu.vector_store %arg8[%c0_22, %c0_23], %37 {strides = array<i32>} : memref<8x1xf32, #tpu.memory_space<vmem>>, vector<8x1xf32>,
    %c0_24 = arith.constant 0 : index
    %c0_25 = arith.constant 0 : index
    %39 = vector.load %arg5[%c0_24, %c0_25] : memref<8x1xf32, #tpu.memory_space<vmem>>, vector<8x1xf32>
    tpu.vector_store %arg5[%c0_24, %c0_25], %12 {strides = array<i32>} : memref<8x1xf32, #tpu.memory_space<vmem>>, vector<8x1xf32>,
    %c0_i32_26 = arith.constant 0 : i32
    %40 = arith.cmpi eq, %arg1, %c0_i32_26 : i32
    %41 = arith.extui %40 : i1 to i32
    %c0_i32_27 = arith.constant 0 : i32
    %42 = arith.cmpi ne, %41, %c0_i32_27 : i32
    scf.if %42 {
      %c0_28 = arith.constant 0 : index
      %c0_29 = arith.constant 0 : index
      %43 = vector.load %arg5[%c0_28, %c0_29] : memref<8x1xf32, #tpu.memory_space<vmem>>, vector<8x1xf32>
      %c0_30 = arith.constant 0 : index
      %c0_31 = arith.constant 0 : index
      %44 = vector.load %arg6[%c0_30, %c0_31] : memref<8x1xf32, #tpu.memory_space<vmem>>, vector<8x1xf32>
      %45 = math.log %44 : vector<8x1xf32>
      %46 = arith.addf %43, %45 : vector<8x1xf32>
      %c0_32 = arith.constant 0 : index
      %c0_33 = arith.constant 0 : index
      %47 = vector.load %arg8[%c0_32, %c0_33] : memref<8x1xf32, #tpu.memory_space<vmem>>, vector<8x1xf32>
      %cst_34 = arith.constant 0.899999976 : f32
      %48 = vector.broadcast %cst_34 : f32 to vector<8x1xf32>
      %49 = arith.mulf %48, %47 : vector<8x1xf32>
      %50 = arith.subf %46, %49 : vector<8x1xf32>
      %c0_35 = arith.constant 0 : index
      %c0_36 = arith.constant 0 : index
      %51 = vector.load %arg7[%c0_35, %c0_36] : memref<8x1xf32, #tpu.memory_space<vmem>>, vector<8x1xf32>
      %cst_37 = arith.constant 6.250000e-03 : f32
      %52 = vector.broadcast %cst_37 : f32 to vector<8x1xf32>
      %53 = arith.mulf %52, %51 : vector<8x1xf32>
      %54 = arith.subf %50, %53 : vector<8x1xf32>
      %c0_38 = arith.constant 0 : index
      %c0_39 = arith.constant 0 : index
      %55 = vector.load %arg4[%c0_38, %c0_39] : memref<8x1xf32, #tpu.memory_space<vmem>>, vector<8x1xf32>
      tpu.vector_store %arg4[%c0_38, %c0_39], %54 {strides = array<i32>} : memref<8x1xf32, #tpu.memory_space<vmem>>, vector<8x1xf32>,
    } else {
    }
    return
  }
  func.func @transform_0(%arg0: i32, %arg1: i32) -> (i32, i32) {
    %c0_i32 = arith.constant 0 : i32
    return %arg0, %arg1 : i32, i32
  }
  func.func @transform_1(%arg0: i32, %arg1: i32) -> (i32, i32) {
    %c0_i32 = arith.constant 0 : i32
    %c0_i32_0 = arith.constant 0 : i32
    return %arg0, %c0_i32 : i32, i32
  }
  func.func @transform_2(%arg0: i32, %arg1: i32) -> (i32, i32) {
    %c0_i32 = arith.constant 0 : i32
    %c0_i32_0 = arith.constant 0 : i32
    return %arg0, %c0_i32 : i32, i32
  }
}

</mosaic_0001>

<bundles_post_ra>
// kernel: tpu_custom_call.1
= control target key start
LH: loop header
LB: loop body
LE: loop exit
PB: predicated region body
PF: predicated region fallthrough
CT: control target
= control target key end

     0   :  { %vm27_vm0 = vcmask 130048   ;;  %vm15_vm1 = vcmask 7168   ;;  %v100_v1 = vmov -inf   ;;  %v101_v3 = vmov 0   ;;  %s140_s0 = inlined_call_operand.vmem [shape: f32[8,16], index: 0, kind: input, shape index: {}]   ;;  %s141_s1 = inlined_call_operand.vmem [shape: s32[8,1], index: 1, kind: input, shape index: {}]   ;;  %s142_s2 = inlined_call_operand.vmem [shape: f32[8,1], index: 2, kind: output, shape index: {}]  }
   0x1   :  { %v20_v0 = vld [vmem:[%s140_s0] sm:$0xff]  ;;  %16 = vst.msk [vmem:[#allocation2] sm:$0xff] %vm15_vm1, %v100_v1  ;;  %92 = vset.pattern.permute.xlu0 %v101_v3  ;;  %93 = vset.pattern.permute.xlu1 %v101_v3  ;;  %v102_v4 = vmov 0.0   ;;  %v23_v13 = vlaneseq }
   0x2   :  { %v28_v2 = vsel %vm27_vm0, %v20_v0, -inf  ;;  %17 = vst.msk [vmem:[#allocation3] sm:$0xff] %vm15_vm1, %v102_v4  ;;  %18 = vst.msk [vmem:[#allocation4] sm:$0xff] %vm15_vm1, %v102_v4  ;;  %v21_v5 = vld [vmem:[%s141_s1] sm:$0xff]  ;;  %v53_v20 = vsel %vm27_vm0, %v20_v0, 0.0 }
   0x3   :  { %29 = vmax.xlane.f32.xlu0 %v28_v2  ;;  %19 = vst.msk [vmem:[#allocation5] sm:$0xff] %vm15_vm1, %v102_v4  ;;  %60 = vperm.xlu1 %93, %v21_v5   ;;  %v24_v14 = vand.u32 127, %v23_v13 }
   0x8   :  { %v31_v6 = vld [vmem:[#allocation2] sm:$0xff] }
   0x9   :  { %v36_v23 = vld [vmem:[#allocation3] sm:$0xff]  ;;  %v52_v30 = vld [vmem:[#allocation4] sm:$0xff] }
   0xa   :  { %v58_v27 = vld [vmem:[#allocation5] sm:$0xff] }
  0x82   :  { %v61_v15 = vpop.permute.xlu1 %60 }
  0x83   :  { %vm62_vm2 = vcmp.eq.s32.totalorder %v24_v14, %v61_v15 }
  0x84   :  { %v63_v17 = vsel %vm62_vm2, %v20_v0, 0.0 }
  0x85   :  { %v64_v19 = vsel %vm27_vm0, %v63_v17, 0.0 }
  0x90   :  { %v30_v7 = vpop.xlane.xlu0 %29 }
  0x91   :  { %v32_v8 = vmax.f32 %v31_v6, %v30_v7 }
  0x93   :  { %v33_v9 = vsub.f32 %v31_v6, %v32_v8  ;;  %69 = vst.msk [vmem:[#allocation2] sm:$0xff] %vm15_vm1, %v32_v8  ;;  %40 = vperm.xlu0 %92, %v32_v8  }
  0x95   :  { %v34_v21 = vmul.f32 1.442695, %v33_v9 }
  0x9a   :  { %v73_v38 = vld [vmem:[#allocation2] sm:$0xff] }
 0x112   :  { %v41_v10 = vpop.permute.xlu0 %40 }
 0x113   :  { %v43_v11 = vsub.f32 %v20_v0, %v41_v10 }
 0x115   :  { %v44_v12 = vmul.f32 1.442695, %v43_v11 }
 0x117   :  { %94 = vpow2.f32 %v44_v12 }
 0x118   :  { %96 = vpow2.f32 %v34_v21 }
 0x121   :  { %v95_v16 = vpop.eup %94 }
 0x122   :  { %v46_v18 = vsel %vm27_vm0, %v95_v16, 0.0  ;;  %v97_v22 = vpop.eup %96 }
 0x123   :  { %47 = vadd.xlane.f32.xlu1 %v46_v18  ;;  %v37_v24 = vmul.f32 %v97_v22, %v36_v23 }
 0x127   :  { %65 = vadd.xlane.f32.xlu1 %v64_v19 }
 0x12b   :  { %54 = vadd.xlane.f32.xlu1 %v53_v20 }
 0x1b0   :  { %v48_v25 = vpop.xlane.xlu1 %47 }
 0x1b1   :  { %v49_v26 = vadd.f32 %v48_v25, %v37_v24 }
 0x1b3   :  { %51 = vst.msk [vmem:[#allocation3] sm:$0xff] %vm15_vm1, %v49_v26 }
 0x1b4   :  { %v66_v28 = vpop.xlane.xlu1 %65 }
 0x1b5   :  { %v67_v29 = vadd.f32 %v66_v28, %v58_v27 }
 0x1b7   :  { %68 = vst.msk [vmem:[#allocation5] sm:$0xff] %vm15_vm1, %v67_v29 }
 0x1b8   :  { %v55_v31 = vpop.xlane.xlu1 %54 }
 0x1b9   :  { %v56_v32 = vadd.f32 %v55_v31, %v52_v30 }
 0x1ba   :  { %v74_v33 = vld [vmem:[#allocation3] sm:$0xff] }
 0x1bb   :  { %98 = vlog2.f32 %v74_v33  ;;  %57 = vst.msk [vmem:[#allocation4] sm:$0xff] %vm15_vm1, %v56_v32 }
 0x1be   :  { %v78_v35 = vld [vmem:[#allocation5] sm:$0xff] }
 0x1bf   :  { %v79_v40 = vmul.f32 0.9, %v78_v35 }
 0x1c2   :  { %v81_v36 = vld [vmem:[#allocation4] sm:$0xff] }
 0x1c3   :  { %v82_v41 = vmul.f32 0.00625, %v81_v36 }
 0x1c5   :  { %v99_v34 = vpop.eup %98 }
 0x1c6   :  { %v76_v37 = vmul.f32 0.6931472, %v99_v34 }
 0x1c8   :  { %v77_v39 = vadd.f32 %v76_v37, %v73_v38 }
 0x1ca   :  { %v80_v42 = vsub.f32 %v77_v39, %v79_v40 }
 0x1cc   :  { %v83_v43 = vsub.f32 %v80_v42, %v82_v41 }
 0x1ce   :  { %84 = vst.msk [vmem:[%s142_s2] sm:$0xff] %vm15_vm1, %v83_v43 }

</bundles_post_ra>
